<compile_context>
chip_gen: v7x
topology: tpu7x:2x2x1
jax: 0.10.0
libtpu: 0.0.40
codegen_flags: <defaults>
</compile_context>

<pallas_src>
import functools

import jax
import jax.numpy as jnp
from jax.experimental import pallas as pl
from jax.experimental.pallas import tpu as pltpu

H1_PAD = 128    # 100 -> 128 lanes
H2_PAD = 1024   # 1000 -> 1024 lanes


def mlp_kernel(x_ref, w1_ref, b1_ref, w2_ref, b2_ref, w3_ref, b3_ref, o_ref):
    x = x_ref[...]  # (TB, 2) f32

    # Layer 1 (fan_in=2): VPU broadcast multiply-add, no MXU involvement.
    h1 = x[:, 0:1] * w1_ref[0:1, :] + x[:, 1:2] * w1_ref[1:2, :]        # (TB, 128)
    h1 = jnp.maximum(h1 + b1_ref[...], 0.0)

    # Layer 2: MXU matmul, bf16 operands, f32 accumulation.
    h2 = jnp.dot(h1.astype(jnp.bfloat16), w2_ref[...],
                 preferred_element_type=jnp.float32)                    # (TB, 1024)
    h2 = jnp.maximum(h2 + b2_ref[...], 0.0)

    # Layer 3 (fan_out=1): VPU mul + XLU lane reduction; scalar bias from SMEM.
    out = jnp.sum(h2 * w3_ref[...], axis=-1, keepdims=True) + b3_ref[0, 0]  # (TB, 1)

    # Direct (TB, 1) store; no lane broadcast, no wrapper slice.
    o_ref[...] = out.astype(o_ref.dtype)


@functools.partial(jax.jit, static_argnames=("batch_tile",))
def mytest4_forward(x, w1p, b1p, w2p, b2p, w3p, b3, *, batch_tile=256):
    B = x.shape[0]

    # Constant-index full-array spec: weights stay VMEM-resident across grid steps.
    full = lambda a: pl.BlockSpec(a.shape, lambda *_: (0,) * a.ndim)

    if B % batch_tile == 0 and B // batch_tile > 1:
        # Batched path: parallel batch grid axis (megacore / both v7x TensorCores).
        grid = (B // batch_tile,)
        x_spec = pl.BlockSpec((batch_tile, 2), lambda i: (i, 0))
        out_spec = pl.BlockSpec((batch_tile, 1), lambda i: (i, 0))
        compiler_params = pltpu.CompilerParams(dimension_semantics=("parallel",))
    else:
        # Small-batch path: single grid step.
        grid = ()
        x_spec = pl.BlockSpec((B, 2), lambda *_: (0, 0))
        out_spec = pl.BlockSpec((B, 1), lambda *_: (0, 0))
        compiler_params = None

    flops = 2 * B * (2 * H1_PAD + H1_PAD * H2_PAD + H2_PAD)
    bytes_accessed = (x.size * 4 + w1p.size * 4 + b1p.size * 4 + w2p.size * 2
                      + b2p.size * 4 + w3p.size * 4 + 4 + B * 4)

    return pl.pallas_call(
        mlp_kernel,
        out_shape=jax.ShapeDtypeStruct((B, 1), jnp.float32),
        grid=grid,
        in_specs=[
            x_spec,
            full(w1p),
            full(b1p),
            full(w2p),
            full(b2p),
            full(w3p),
            pl.BlockSpec(memory_space=pltpu.MemorySpace.SMEM),  # scalar bias b3
        ],
        out_specs=out_spec,
        compiler_params=compiler_params,
        cost_estimate=pl.CostEstimate(flops=flops, transcendentals=0,
                                      bytes_accessed=bytes_accessed),
    )(x, w1p, b1p, w2p, b2p, w3p, b3)


def init_params(key):
    # Deterministic init mimicking nn.Linear's uniform(-1/sqrt(in), 1/sqrt(in)).
    ks = jax.random.split(key, 6)

    def linear(kw, kb, fan_in, fan_out):
        bound = 1.0 / jnp.sqrt(jnp.float32(fan_in))
        w = jax.random.uniform(kw, (fan_in, fan_out), jnp.float32, -bound, bound)
        b = jax.random.uniform(kb, (1, fan_out), jnp.float32, -bound, bound)
        return w, b

    w1, b1 = linear(ks[0], ks[1], 2, 100)
    w2, b2 = linear(ks[2], ks[3], 100, 1000)
    w3, b3 = linear(ks[4], ks[5], 1000, 1)

    # Pad to lane-dense, 128-aligned slabs. Zero padding is mathematically inert:
    # padded b1/b2 lanes give ReLU(0)=0 activations, padded w2 rows / w3 lanes are 0.
    def pad2(a, rows, cols):
        return jnp.zeros((rows, cols), a.dtype).at[:a.shape[0], :a.shape[1]].set(a)

    w1p = pad2(w1, 8, H1_PAD)                              # (8, 128)    f32
    b1p = pad2(b1, 1, H1_PAD)                              # (1, 128)    f32
    w2p = pad2(w2, H1_PAD, H2_PAD).astype(jnp.bfloat16)    # (128, 1024) bf16 (dominant DMA)
    b2p = pad2(b2, 1, H2_PAD)                              # (1, 1024)   f32
    w3p = pad2(w3.T, 1, H2_PAD)                            # (1, 1024)   f32 row for VPU reduce
    # b3 stays a (1, 1) f32 scalar -> SMEM.

    kernel_params = (w1p, b1p, w2p, b2p, w3p, b3)
    raw_params = (w1, b1, w2, b2, w3, b3)                  # exact f32 model (reference only)
    return kernel_params, raw_params


if __name__ == "__main__":
    key = jax.random.PRNGKey(0)
    k_x, k_xb, k_p = jax.random.split(key, 3)

    kernel_params, raw_params = init_params(k_p)
    w1, b1, w2, b2, w3, b3 = raw_params

    def reference_f32(xin):
        # Exact f32 reference of the PyTorch MyTest4 forward.
        h1 = jnp.maximum(xin @ w1 + b1, 0.0)
        h2 = jnp.maximum(h1 @ w2 + b2, 0.0)
        return h2 @ w3 + b3

    # --- Small-batch check (single grid step) ---
    B = 8
    x = jax.random.normal(k_x, (B, 2), jnp.float32)
    out = mytest4_forward(x, *kernel_params)
    jax.block_until_ready(out)
    ref = reference_f32(x)
    assert out.shape == (B, 1)
    # bf16 w2 / h1 on the MXU path -> tolerance vs. the true f32 model (per review).
    assert jnp.allclose(out, ref, atol=1e-2, rtol=1e-2), \
        float(jnp.max(jnp.abs(out - ref)))

    # --- Batched check (parallel batch grid axis, weights VMEM-resident) ---
    Bb = 512
    xb = jax.random.normal(k_xb, (Bb, 2), jnp.float32)
    outb = mytest4_forward(xb, *kernel_params)
    jax.block_until_ready(outb)
    refb = reference_f32(xb)
    assert outb.shape == (Bb, 1)
    assert jnp.allclose(outb, refb, atol=1e-2, rtol=1e-2), \
        float(jnp.max(jnp.abs(outb - refb)))

    print("KERNEL_OK")
</pallas_src>

<mosaic_0001>
module attributes {stable_mosaic.version = 11 : i64} {
  func.func @mlp_kernel(%arg0: memref<8x2xf32, #tpu.memory_space<vmem>>, %arg1: memref<8x128xf32, #tpu.memory_space<vmem>>, %arg2: memref<1x128xf32, #tpu.memory_space<vmem>>, %arg3: memref<128x1024xbf16, #tpu.memory_space<vmem>>, %arg4: memref<1x1024xf32, #tpu.memory_space<vmem>>, %arg5: memref<1x1024xf32, #tpu.memory_space<vmem>>, %arg6: memref<1x1xf32, #tpu.memory_space<smem>>, %arg7: memref<8x1xf32, #tpu.memory_space<vmem>>) attributes {dimension_semantics = [], scalar_prefetch = 0 : i64, scratch_operands = 0 : i64, tpu.core_type = #tpu.core_type<tc>} {
    %c0 = arith.constant 0 : index
    %c0_0 = arith.constant 0 : index
    %0 = vector.load %arg0[%c0, %c0_0] : memref<8x2xf32, #tpu.memory_space<vmem>>, vector<8x2xf32>
    %1 = vector.extract_strided_slice %0 {offsets = [0, 0], sizes = [8, 1], strides = [1, 1]} : vector<8x2xf32> to vector<8x1xf32>
    %c0_1 = arith.constant 0 : index
    %c0_2 = arith.constant 0 : index
    %2 = vector.load %arg1[%c0_1, %c0_2] : memref<8x128xf32, #tpu.memory_space<vmem>>, vector<1x128xf32>
    %3 = vector.broadcast %1 : vector<8x1xf32> to vector<8x128xf32>
    %4 = vector.broadcast %2 : vector<1x128xf32> to vector<8x128xf32>
    %5 = arith.mulf %3, %4 : vector<8x128xf32>
    %6 = vector.extract_strided_slice %0 {offsets = [0, 1], sizes = [8, 1], strides = [1, 1]} : vector<8x2xf32> to vector<8x1xf32>
    %c1 = arith.constant 1 : index
    %c0_3 = arith.constant 0 : index
    %7 = vector.load %arg1[%c1, %c0_3] : memref<8x128xf32, #tpu.memory_space<vmem>>, vector<1x128xf32>
    %8 = vector.broadcast %6 : vector<8x1xf32> to vector<8x128xf32>
    %9 = vector.broadcast %7 : vector<1x128xf32> to vector<8x128xf32>
    %10 = arith.mulf %8, %9 : vector<8x128xf32>
    %11 = arith.addf %5, %10 : vector<8x128xf32>
    %c0_4 = arith.constant 0 : index
    %c0_5 = arith.constant 0 : index
    %12 = vector.load %arg2[%c0_4, %c0_5] : memref<1x128xf32, #tpu.memory_space<vmem>>, vector<1x128xf32>
    %13 = vector.broadcast %12 : vector<1x128xf32> to vector<8x128xf32>
    %14 = arith.addf %11, %13 : vector<8x128xf32>
    %cst = arith.constant 0.000000e+00 : f32
    %15 = vector.broadcast %cst : f32 to vector<8x128xf32>
    %16 = arith.maximumf %14, %15 : vector<8x128xf32>
    %17 = arith.truncf %16 : vector<8x128xf32> to vector<8x128xbf16>
    %c0_6 = arith.constant 0 : index
    %c0_7 = arith.constant 0 : index
    %18 = vector.load %arg3[%c0_6, %c0_7] : memref<128x1024xbf16, #tpu.memory_space<vmem>>, vector<128x1024xbf16>
    %cst_8 = arith.constant dense<0.000000e+00> : vector<8x1024xf32>
    %19 = tpu.matmul %17, %18, %cst_8 {dimension_numbers = #tpu.dot_dimension_numbers<[1], [0], [0], [1], [0, 0, 1, 1], [], []>} : vector<8x128xbf16>, vector<128x1024xbf16>, vector<8x1024xf32> -> vector<8x1024xf32>
    %c0_9 = arith.constant 0 : index
    %c0_10 = arith.constant 0 : index
    %20 = vector.load %arg4[%c0_9, %c0_10] : memref<1x1024xf32, #tpu.memory_space<vmem>>, vector<1x1024xf32>
    %21 = vector.broadcast %20 : vector<1x1024xf32> to vector<8x1024xf32>
    %22 = arith.addf %19, %21 : vector<8x1024xf32>
    %cst_11 = arith.constant 0.000000e+00 : f32
    %23 = vector.broadcast %cst_11 : f32 to vector<8x1024xf32>
    %24 = arith.maximumf %22, %23 : vector<8x1024xf32>
    %c0_12 = arith.constant 0 : index
    %c0_13 = arith.constant 0 : index
    %25 = vector.load %arg5[%c0_12, %c0_13] : memref<1x1024xf32, #tpu.memory_space<vmem>>, vector<1x1024xf32>
    %26 = vector.broadcast %25 : vector<1x1024xf32> to vector<8x1024xf32>
    %27 = arith.mulf %24, %26 : vector<8x1024xf32>
    %cst_14 = arith.constant dense<0.000000e+00> : vector<8xf32>
    %28 = vector.multi_reduction <add>, %27, %cst_14 [1] : vector<8x1024xf32> to vector<8xf32>
    %29 = vector.shape_cast %28 : vector<8xf32> to vector<8x1xf32>
    %c0_15 = arith.constant 0 : index
    %c0_16 = arith.constant 0 : index
    %30 = memref.load %arg6[%c0_15, %c0_16] : memref<1x1xf32, #tpu.memory_space<smem>>
    %31 = vector.broadcast %30 : f32 to vector<8x1xf32>
    %32 = arith.addf %29, %31 : vector<8x1xf32>
    %c0_17 = arith.constant 0 : index
    %c0_18 = arith.constant 0 : index
    %33 = vector.load %arg7[%c0_17, %c0_18] : memref<8x1xf32, #tpu.memory_space<vmem>>, vector<8x1xf32>
    tpu.vector_store %arg7[%c0_17, %c0_18], %32 {strides = array<i32>} : memref<8x1xf32, #tpu.memory_space<vmem>>, vector<8x1xf32>,
    return
  }
}

</mosaic_0001>

<bundles_post_ra>
// kernel: mytest4_forward.1
= control target key start
LH: loop header
LB: loop body
LE: loop exit
PB: predicated region body
PF: predicated region fallthrough
CT: control target
= control target key end

     0   :  { %13 = vsyncpa [#allocation4], 0  ;;  %s840_s24 = smov [#allocation3]   ;;  %s964_s0 = inlined_call_operand.vmem [shape: f32[8,2], index: 0, kind: input, shape index: {}]   ;;  %s965_s1 = inlined_call_operand.vmem [shape: f32[8,128], index: 1, kind: input, shape index: {}]   ;;  %s966_s2 = inlined_call_operand.vmem [shape: f32[1,128], index: 2, kind: input, shape index: {}]   ;;  %s967_s3 = inlined_call_operand.hbm [shape: bf16[128,1024], index: 3, kind: input, shape index: {}]   ;;  %s968_s4 = inlined_call_operand.vmem [shape: f32[1,1024], index: 4, kind: input, shape index: {}]   ;;  %s969_s5 = inlined_call_operand.vmem [shape: f32[1,1024], index: 5, kind: input, shape index: {}]   ;;  %s970_s6 = inlined_call_operand.<no memory space> [shape: f32[1,1], index: 6, kind: input, shape index: {}]   ;;  %s971_s7 = inlined_call_operand.vmem [shape: f32[8,1], index: 7, kind: output, shape index: {}]  }
   0x1   :  { %s25_s25 = sshll.u32 %s840_s24, 4  ;;  %s816_s28 = scalar_lea.hbm %s967_s3, 8192  ;;  %s26_s25 = int_to_ptr.vmem [resolvable:$true] %s25_s25 }
   0x2   :  { %p817_p0 = scmp.ne.s32.totalorder %s967_s3, %s816_s28  ;;  %p820_p1 = scmp.lt.u32.totalorder %s816_s28, %s967_s3 }
   0x4   :  { %p822_p2 = pnand %p820_p1, %p817_p0 }
   0x6   :  { %825 = shalt.err (!%p822_p2)
}
   0x7   :  { %s826_s10 = scalar_lea.vmem %s26_s25, 8192  ;;  %p831_p4 = scmp.lt.s32.totalorder %s26_s25, %s26_s25 }
   0x8   :  { %p827_p3 = scmp.ne.s32.totalorder %s26_s25, %s826_s10  ;;  %p832_p5 = scmp.lt.s32.totalorder %s826_s10, %s826_s10 }
   0xa   :  { %p833_p6 = por %p832_p5, %p831_p4 }
   0xc   :  { %p834_p7 = pnand %p833_p6, %p827_p3 }
   0xe   :  { %837 = shalt.err (!%p834_p7)
}
   0xf   :  { %s841_s11 = smov 512   ;;  %s842_s12 = smov 32  }
  0x10   :  { %31 = dma.hbm_to_vmem [thread:$0]  %s967_s3, 8192, %s26_s25, [#allocation4], %s841_s11, %s841_s11, %s842_s12  }
  0x11   :  { %838 = dma.done.wait [#allocation4], 8192  }
  0x12   :  { %839 = vsyncadd [#allocation4], 4294959104  ;;  %v843_v0 = vmov 0   ;;  %v42_v1 = vld [vmem:[%s964_s0] sm:$0xff]  ;;  %v76_v5 = vld [vmem:[#allocation3 + $0x8] sm:$0xff]  ;;  %v844_v21 = vmov 1  }
  0x13   :  { %814 = vset.pattern.permute.xlu0 %v843_v0  ;;  %533 = vmatprep.mubr.bf16.mxu0 %v843_v0  ;;  %v75_v2 = vld [vmem:[#allocation3] sm:$0xff]  ;;  %v80_v6 = vld [vmem:[#allocation3 + $0x28] sm:$0xff]  ;;  %v903_v38 = vld [vmem:[#allocation3 + $0x10] sm:$0xff]  ;;  %vm735_vm0 = vcmask 7168  }
  0x14   :  { %574 = vmatprep.mubr.bf16.mxu1 %v843_v0  ;;  %v79_v3 = vld [vmem:[#allocation3 + $0x20] sm:$0xff]  ;;  %46 = vperm.xlu0 %814, %v42_v1   ;;  %v748_v9 = vcombine.high %v76_v5, %v80_v6  ;;  %v747_v10 = vcombine.low %v76_v5, %v80_v6  ;;  %v84_v12 = vld [vmem:[#allocation3 + $0x48] sm:$0xff]  ;;  %v905_v39 = vld [vmem:[#allocation3 + $0x30] sm:$0xff] }
  0x15   :  { %v746_v4 = vcombine.high %v75_v2, %v79_v3  ;;  %v745_v7 = vcombine.low %v75_v2, %v79_v3  ;;  %v83_v8 = vld [vmem:[#allocation3 + $0x40] sm:$0xff]  ;;  %v88_v13 = vld [vmem:[#allocation3 + $0x68] sm:$0xff]  ;;  %v907_v40 = vld [vmem:[#allocation3 + $0x18] sm:$0xff]  ;;  %v749_v47 = vcombine.low %v903_v38, %v905_v39 }
  0x16   :  { %v87_v11 = vld [vmem:[#allocation3 + $0x60] sm:$0xff]  ;;  %v756_v15 = vcombine.high %v84_v12, %v88_v13  ;;  %v92_v18 = vld [vmem:[#allocation3 + $0x88] sm:$0xff]  ;;  %542 = vmatprep.subr.bf16.mxu1 %v748_v9  ;;  %v755_v22 = vcombine.low %v84_v12, %v88_v13  ;;  %v909_v43 = vld [vmem:[#allocation3 + $0x38] sm:$0xff] }
  0x17   :  { %501 = vmatprep.subr.bf16.mxu0 %v746_v4  ;;  %v754_v14 = vcombine.high %v83_v8, %v87_v11  ;;  %v91_v16 = vld [vmem:[#allocation3 + $0x80] sm:$0xff]  ;;  %v753_v19 = vcombine.low %v83_v8, %v87_v11  ;;  %v96_v20 = vld [vmem:[#allocation3 + $0xa8] sm:$0xff]  ;;  %543 = vmatpush1.bf16.msra.mxu1 %v747_v10  ;;  %v751_v48 = vcombine.low %v907_v40, %v909_v43 }
  0x18   :  { %v95_v17 = vld [vmem:[#allocation3 + $0xa0] sm:$0xff]  ;;  %502 = vmatpush1.bf16.msra.mxu0 %v745_v7  ;;  %815 = vset.pattern.permute.xlu0 %v844_v21  ;;  %v764_v24 = vcombine.high %v92_v18, %v96_v20  ;;  %v100_v27 = vld [vmem:[#allocation3 + $0xc8] sm:$0xff]  ;;  %v763_v30 = vcombine.low %v92_v18, %v96_v20  ;;  %v750_v10 = vcombine.high %v903_v38, %v905_v39  ;;  %v85_v21 = vld [vmem:[#allocation3 + $0x50] sm:$0xff] }
  0x19   :  { %v762_v23 = vcombine.high %v91_v16, %v95_v17  ;;  %56 = vperm.xlu0 %815, %v42_v1   ;;  %503 = vmatprep.subr.bf16.mxu0 %v754_v14  ;;  %v99_v25 = vld [vmem:[#allocation3 + $0xc0] sm:$0xff]  ;;  %v104_v28 = vld [vmem:[#allocation3 + $0xe8] sm:$0xff]  ;;  %v761_v29 = vcombine.low %v91_v16, %v95_v17  ;;  %v752_v11 = vcombine.high %v907_v40, %v909_v43 }
  0x1a   :  { %v103_v26 = vld [vmem:[#allocation3 + $0xe0] sm:$0xff]  ;;  %544 = vmatprep.subr.bf16.mxu1 %v756_v15  ;;  %v772_v32 = vcombine.high %v100_v27, %v104_v28  ;;  %v108_v35 = vld [vmem:[#allocation3 + $0x108] sm:$0xff]  ;;  %v771_v41 = vcombine.low %v100_v27, %v104_v28 }
  0x1b   :  { %545 = vmatpush1.bf16.msra.mxu1 %v755_v22  ;;  %v770_v31 = vcombine.high %v99_v25, %v103_v26  ;;  %v107_v33 = vld [vmem:[#allocation3 + $0x100] sm:$0xff]  ;;  %v112_v36 = vld [vmem:[#allocation3 + $0x128] sm:$0xff]  ;;  %v769_v37 = vcombine.low %v99_v25, %v103_v26  ;;  %v89_v22 = vld [vmem:[#allocation3 + $0x70] sm:$0xff] }
  0x1c   :  { %504 = vmatpush1.bf16.msra.mxu0 %v753_v19  ;;  %546 = vmatprep.subr.bf16.mxu1 %v764_v24  ;;  %v111_v34 = vld [vmem:[#allocation3 + $0x120] sm:$0xff]  ;;  %v780_v44 = vcombine.high %v108_v35, %v112_v36  ;;  %v116_v49 = vld [vmem:[#allocation3 + $0x148] sm:$0xff]  ;;  %v779_v52 = vcombine.low %v108_v35, %v112_v36  ;;  %v90_v24 = vld [vmem:[#allocation3 + $0x78] sm:$0xff]  ;;  %v758_v27 = vcombine.high %v85_v21, %v89_v22 }
  0x1d   :  { %505 = vmatprep.subr.bf16.mxu0 %v762_v23  ;;  %v778_v42 = vcombine.high %v107_v33, %v111_v34  ;;  %v115_v45 = vld [vmem:[#allocation3 + $0x140] sm:$0xff]  ;;  %v120_v50 = vld [vmem:[#allocation3 + $0x168] sm:$0xff]  ;;  %v777_v51 = vcombine.low %v107_v33, %v111_v34  ;;  %v86_v23 = vld [vmem:[#allocation3 + $0x58] sm:$0xff]  ;;  %v757_v33 = vcombine.low %v85_v21, %v89_v22 }
  0x1e   :  { %v119_v46 = vld [vmem:[#allocation3 + $0x160] sm:$0xff]  ;;  %v788_v54 = vcombine.high %v116_v49, %v120_v50  ;;  %v124_v57 = vld [vmem:[#allocation3 + $0x188] sm:$0xff]  ;;  %v787_v60 = vcombine.low %v116_v49, %v120_v50  ;;  %v760_v28 = vcombine.high %v86_v23, %v90_v24  ;;  %v759_v34 = vcombine.low %v86_v23, %v90_v24 }
  0x1f   :  { %547 = vmatpush1.bf16.msra.mxu1 %v763_v30  ;;  %v786_v53 = vcombine.high %v115_v45, %v119_v46  ;;  %v123_v55 = vld [vmem:[#allocation3 + $0x180] sm:$0xff]  ;;  %v128_v58 = vld [vmem:[#allocation3 + $0x1a8] sm:$0xff]  ;;  %v785_v59 = vcombine.low %v115_v45, %v119_v46  ;;  %v97_v30 = vld [vmem:[#allocation3 + $0xb0] sm:$0xff] }
  0x20   :  { %506 = vmatpush1.bf16.msra.mxu0 %v761_v29  ;;  %548 = vmatprep.subr.bf16.mxu1 %v772_v32  ;;  %v127_v56 = vld [vmem:[#allocation3 + $0x1a0] sm:$0xff]  ;;  %v796_v62 = vcombine.high %v124_v57, %v128_v58  ;;  %v132_v2 = vld [vmem:[#allocation3 + $0x1c8] sm:$0xff]  ;;  %v795_v5 = vcombine.low %v124_v57, %v128_v58  ;;  %v93_v29 = vld [vmem:[#allocation3 + $0x90] sm:$0xff] }
  0x21   :  { %507 = vmatprep.subr.bf16.mxu0 %v770_v31  ;;  %v794_v61 = vcombine.high %v123_v55, %v127_v56  ;;  %v131_v63 = vld [vmem:[#allocation3 + $0x1c0] sm:$0xff]  ;;  %v136_v3 = vld [vmem:[#allocation3 + $0x1e8] sm:$0xff]  ;;  %v793_v4 = vcombine.low %v123_v55, %v127_v56  ;;  %v94_v31 = vld [vmem:[#allocation3 + $0x98] sm:$0xff]  ;;  %v766_v35 = vcombine.high %v93_v29, %v97_v30  ;;  %v765_v38 = vcombine.low %v93_v29, %v97_v30 }
  0x22   :  { %v135_v1 = vld [vmem:[#allocation3 + $0x1e0] sm:$0xff]  ;;  %v804_v7 = vcombine.high %v132_v2, %v136_v3  ;;  %v803_v9 = vcombine.low %v132_v2, %v136_v3  ;;  %v98_v32 = vld [vmem:[#allocation3 + $0xb8] sm:$0xff]  ;;  %v109_v45 = vld [vmem:[#allocation3 + $0x110] sm:$0xff] }
  0x23   :  { %549 = vmatpush1.bf16.msra.mxu1 %v771_v41  ;;  %v802_v6 = vcombine.high %v131_v63, %v135_v1  ;;  %v801_v8 = vcombine.low %v131_v63, %v135_v1  ;;  %v742_v13 = vld [vmem:[%s965_s1] ss:$0 sm:$0xff]  ;;  %v743_v14 = vld [vmem:[%s965_s1 + $0x1] ss:$0 sm:$0xff]  ;;  %v768_v36 = vcombine.high %v94_v31, %v98_v32  ;;  %v105_v41 = vld [vmem:[#allocation3 + $0xf0] sm:$0xff]  ;;  %v767_v39 = vcombine.low %v94_v31, %v98_v32 }
  0x24   :  { %508 = vmatpush1.bf16.msra.mxu0 %v769_v37  ;;  %550 = vmatprep.subr.bf16.mxu1 %v780_v44  ;;  %v744_v18 = vld [vmem:[%s966_s2] ss:$0 sm:$0xff]  ;;  %v101_v37 = vld [vmem:[#allocation3 + $0xd0] sm:$0xff]  ;;  %v106_v44 = vld [vmem:[#allocation3 + $0xf8] sm:$0xff] }
  0x25   :  { %509 = vmatprep.subr.bf16.mxu0 %v778_v42  ;;  %v102_v42 = vld [vmem:[#allocation3 + $0xd8] sm:$0xff]  ;;  %v774_v40 = vcombine.high %v101_v37, %v105_v41  ;;  %v113_v46 = vld [vmem:[#allocation3 + $0x130] sm:$0xff]  ;;  %v773_v49 = vcombine.low %v101_v37, %v105_v41  ;;  %v673_v24 = vld [vmem:[%s969_s5] sm:$0xff] }
  0x26   :  { %v776_v43 = vcombine.high %v102_v42, %v106_v44  ;;  %v775_v50 = vcombine.low %v102_v42, %v106_v44  ;;  %v122_v55 = vld [vmem:[#allocation3 + $0x178] sm:$0xff]  ;;  %v781_v56 = vcombine.low %v109_v45, %v113_v46 }
  0x27   :  { %551 = vmatpush1.bf16.msra.mxu1 %v779_v52  ;;  %v117_v52 = vld [vmem:[#allocation3 + $0x150] sm:$0xff]  ;;  %v130_v63 = vld [vmem:[#allocation3 + $0x1b8] sm:$0xff] }
  0x28   :  { %510 = vmatpush1.bf16.msra.mxu0 %v777_v51  ;;  %552 = vmatprep.subr.bf16.mxu1 %v788_v54  ;;  %v782_v51 = vcombine.high %v109_v45, %v113_v46  ;;  %v118_v54 = vld [vmem:[#allocation3 + $0x158] sm:$0xff] }
  0x29   :  { %511 = vmatprep.subr.bf16.mxu0 %v786_v53  ;;  %v121_v53 = vld [vmem:[#allocation3 + $0x170] sm:$0xff]  ;;  %v791_v2 = vcombine.low %v118_v54, %v122_v55 }
  0x2a   :  { %v790_v58 = vcombine.high %v117_v52, %v121_v53  ;;  %v789_v1 = vcombine.low %v117_v52, %v121_v53 }
  0x2b   :  { %553 = vmatpush1.bf16.msra.mxu1 %v787_v60  ;;  %v125_v60 = vld [vmem:[#allocation3 + $0x190] sm:$0xff] }
  0x2c   :  { %512 = vmatpush1.bf16.msra.mxu0 %v785_v59  ;;  %554 = vmatprep.subr.bf16.mxu1 %v796_v62  ;;  %v792_v59 = vcombine.high %v118_v54, %v122_v55  ;;  %v126_v62 = vld [vmem:[#allocation3 + $0x198] sm:$0xff] }
  0x2d   :  { %513 = vmatprep.subr.bf16.mxu0 %v794_v61  ;;  %v129_v61 = vld [vmem:[#allocation3 + $0x1b0] sm:$0xff] }
  0x2e   :  { %v798_v3 = vcombine.high %v125_v60, %v129_v61 }
  0x2f   :  { %555 = vmatpush1.bf16.msra.mxu1 %v795_v5  ;;  %v133_v5 = vld [vmem:[#allocation3 + $0x1d0] sm:$0xff] }
  0x30   :  { %514 = vmatpush1.bf16.msra.mxu0 %v793_v4  ;;  %556 = vmatprep.subr.bf16.mxu1 %v804_v7  ;;  %v800_v4 = vcombine.high %v126_v62, %v130_v63  ;;  %v134_v7 = vld [vmem:[#allocation3 + $0x1d8] sm:$0xff] }
  0x31   :  { %515 = vmatprep.subr.bf16.mxu0 %v802_v6  ;;  %v137_v6 = vld [vmem:[#allocation3 + $0x1f0] sm:$0xff] }
  0x33   :  { %557 = vmatpush1.bf16.msra.mxu1 %v803_v9  ;;  %v797_v9 = vcombine.low %v125_v60, %v129_v61 }
  0x34   :  { %516 = vmatpush1.bf16.msra.mxu0 %v801_v8  ;;  %624 = vmatprep.subr.bf16.mxu1 %v752_v11  ;;  %v138_v8 = vld [vmem:[#allocation3 + $0x1f8] sm:$0xff]  ;;  %v806_v11 = vcombine.high %v133_v5, %v137_v6 }
  0x35   :  { %583 = vmatprep.subr.bf16.mxu0 %v750_v10  ;;  %v799_v10 = vcombine.low %v126_v62, %v130_v63 }
  0x93   :  { %v47_v12 = vpop.permute.xlu0 %46 }
  0x94   :  { %v53_v16 = vmul.f32 %v742_v13, %v47_v12  ;;  %v808_v12 = vcombine.high %v134_v7, %v138_v8  ;;  %v805_v13 = vcombine.low %v133_v5, %v137_v6 }
  0x98   :  { %v57_v15 = vpop.permute.xlu0 %56 }
  0x99   :  { %v63_v17 = vmul.f32 %v743_v14, %v57_v15  ;;  %v807_v14 = vcombine.low %v134_v7, %v138_v8  ;;  %v141_v15 = vlaneseq }
  0x9b   :  { %v64_v19 = vadd.f32 %v63_v17, %v53_v16  ;;  %v942_v16 = vshrl.u32 %v141_v15, 7 }
  0x9d   :  { %v72_v20 = vadd.f32 %v744_v18, %v64_v19  ;;  %v143_v17 = vsub.s32 0, %v942_v16  ;;  %v151_v18 = vsub.s32 2, %v942_v16  ;;  %v139_v19 = vld [vmem:[%s968_s4] sm:$0xff]  ;;  %v155_v21 = vsub.s32 3, %v942_v16 }
  0x9e   :  { %v159_v53 = vsub.s32 4, %v942_v16  ;;  %v167_v54 = vsub.s32 6, %v942_v16  ;;  %v163_v55 = vsub.s32 5, %v942_v16 }
  0x9f   :  { %v73_v25 = vmax.f32 %v72_v20, 0.0  ;;  %v147_v20 = vsub.s32 1, %v942_v16  ;;  %v144_v22 = vrot.slane %v139_v19, %v143_v17  ;;  %v152_v23 = vrot.slane %v139_v19, %v151_v18 }
  0xa0   :  { %v678_v30 = vrot.slane %v673_v24, %v143_v17  ;;  %v698_v6 = vrot.slane %v673_v24, %v163_v55 }
  0xa1   :  { %v928_v26 = vpack.c.bf16 %v73_v25, %v73_v25  ;;  %v148_v25 = vrot.slane %v139_v19, %v147_v20 }
  0xa3   :  { %534 = vmatmul.mubr.bf16.vlgmr.msra.gmra.mrb[0].mxu0 %v928_v26  ;;  %575 = vmatmul.mubr.bf16.vlgmr.msra.gmra.mrb[0].mxu1 %v928_v26 }
  0xa4   :  { %584 = vmatpush1.bf16.msra.mxu0 %v749_v47  ;;  %625 = vmatpush1.bf16.msra.mxu1 %v751_v48  ;;  %v110_v47 = vld [vmem:[#allocation3 + $0x118] sm:$0xff] }
  0xa5   :  { %585 = vmatprep.subr.bf16.mxu0 %v758_v27  ;;  %626 = vmatprep.subr.bf16.mxu1 %v760_v28  ;;  %v114_v48 = vld [vmem:[#allocation3 + $0x138] sm:$0xff] }
  0xa6   :  { %615 = vmatprep.mubr.bf16.mxu0 %v843_v0  ;;  %656 = vmatprep.mubr.bf16.mxu1 %v843_v0  ;;  %v784_v0 = vcombine.high %v110_v47, %v114_v48  ;;  %v783_v57 = vcombine.low %v110_v47, %v114_v48  ;;  %v690_v48 = vrot.slane %v673_v24, %v155_v21 }
  0xa8   :  { %586 = vmatpush1.bf16.msra.mxu0 %v757_v33  ;;  %627 = vmatpush1.bf16.msra.mxu1 %v759_v34 }
  0xa9   :  { %587 = vmatprep.subr.bf16.mxu0 %v766_v35  ;;  %628 = vmatprep.subr.bf16.mxu1 %v768_v36  ;;  %v682_v35 = vrot.slane %v673_v24, %v147_v20 }
  0xac   :  { %588 = vmatpush1.bf16.msra.mxu0 %v765_v38  ;;  %629 = vmatpush1.bf16.msra.mxu1 %v767_v39 }
  0xad   :  { %589 = vmatprep.subr.bf16.mxu0 %v774_v40  ;;  %630 = vmatprep.subr.bf16.mxu1 %v776_v43  ;;  %v686_v40 = vrot.slane %v673_v24, %v151_v18 }
  0xb0   :  { %590 = vmatpush1.bf16.msra.mxu0 %v773_v49  ;;  %631 = vmatpush1.bf16.msra.mxu1 %v775_v50 }
  0xb1   :  { %591 = vmatprep.subr.bf16.mxu0 %v782_v51  ;;  %632 = vmatprep.subr.bf16.mxu1 %v784_v0 }
  0xb4   :  { %592 = vmatpush1.bf16.msra.mxu0 %v781_v56  ;;  %633 = vmatpush1.bf16.msra.mxu1 %v783_v57  ;;  %v171_v56 = vsub.s32 7, %v942_v16  ;;  %v160_v57 = vrot.slane %v139_v19, %v159_v53  ;;  %v702_v16 = vrot.slane %v673_v24, %v167_v54 }
  0xb5   :  { %593 = vmatprep.subr.bf16.mxu0 %v790_v58  ;;  %634 = vmatprep.subr.bf16.mxu1 %v792_v59  ;;  %v168_v58 = vrot.slane %v139_v19, %v167_v54  ;;  %v164_v59 = vrot.slane %v139_v19, %v163_v55 }
  0xb6   :  { %v172_v60 = vrot.slane %v139_v19, %v171_v56  ;;  %v706_v20 = vrot.slane %v673_v24, %v171_v56 }
  0xb8   :  { %594 = vmatpush1.bf16.msra.mxu0 %v789_v1  ;;  %635 = vmatpush1.bf16.msra.mxu1 %v791_v2  ;;  %v694_v1 = vrot.slane %v673_v24, %v159_v53 }
  0xb9   :  { %595 = vmatprep.subr.bf16.mxu0 %v798_v3  ;;  %636 = vmatprep.subr.bf16.mxu1 %v800_v4 }
  0xbc   :  { %596 = vmatpush1.bf16.msra.mxu0 %v797_v9  ;;  %637 = vmatpush1.bf16.msra.mxu1 %v799_v10 }
  0xbd   :  { %597 = vmatprep.subr.bf16.mxu0 %v806_v11  ;;  %638 = vmatprep.subr.bf16.mxu1 %v808_v12 }
  0xc0   :  { %598 = vmatpush1.bf16.msra.mxu0 %v805_v13  ;;  %639 = vmatpush1.bf16.msra.mxu1 %v807_v14 }
  0xc3   :  { %616 = vmatmul.mubr.bf16.vlgmr.msra.gmra.mrb[4].mxu0 %v928_v26  ;;  %657 = vmatmul.mubr.bf16.vlgmr.msra.gmra.mrb[4].mxu1 %v928_v26  ;;  %v156_v26 = vrot.slane %v139_v19, %v155_v21 }
 0x176   :  { %v535_v27 = vpop.f32.mrb[0].mxu0  ;;  %v576_v28 = vpop.f32.mrb[0].mxu1 }
 0x177   :  { %v536_v29 = vadd.f32 %v535_v27, %v144_v22  ;;  %v577_v31 = vadd.f32 %v576_v28, %v152_v23  ;;  %v537_v32 = vpop.f32.mrb[1].mxu0  ;;  %v578_v33 = vpop.f32.mrb[1].mxu1  ;;  %v733_v27 = vstv %s970_s6 }
 0x178   :  { %v538_v34 = vadd.f32 %v537_v32, %v148_v25  ;;  %v579_v36 = vadd.f32 %v578_v33, %v156_v26  ;;  %v539_v37 = vpop.f32.mrb[2].mxu0  ;;  %v580_v41 = vpop.f32.mrb[2].mxu1 }
 0x179   :  { %v665_v42 = vmax.f32 %v536_v29, 0.0  ;;  %v540_v44 = vpop.f32.mrb[3].mxu0  ;;  %v581_v38 = vpop.f32.mrb[3].mxu1  ;;  %v667_v39 = vmax.f32 %v577_v31, 0.0 }
 0x17a   :  { %v666_v43 = vmax.f32 %v538_v34, 0.0  ;;  %v668_v47 = vmax.f32 %v579_v36, 0.0 }
 0x17b   :  { %v715_v45 = vmul.f32 %v678_v30, %v665_v42  ;;  %v717_v49 = vmul.f32 %v686_v40, %v667_v39 }
 0x17c   :  { %v716_v46 = vmul.f32 %v682_v35, %v666_v43  ;;  %v718_v51 = vmul.f32 %v690_v48, %v668_v47 }
 0x17e   :  { %v723_v50 = vadd.f32 %v716_v46, %v715_v45 }
 0x180   :  { %v724_v0 = vadd.f32 %v723_v50, %v717_v49 }
 0x182   :  { %v725_v52 = vadd.f32 %v724_v0, %v718_v51 }
 0x196   :  { %v617_v61 = vpop.f32.mrb[4].mxu0  ;;  %v658_v62 = vpop.f32.mrb[4].mxu1 }
 0x197   :  { %v618_v63 = vadd.f32 %v617_v61, %v160_v57  ;;  %v659_v2 = vadd.f32 %v658_v62, %v168_v58  ;;  %v619_v3 = vpop.f32.mrb[5].mxu0  ;;  %v660_v4 = vpop.f32.mrb[5].mxu1 }
 0x198   :  { %v620_v5 = vadd.f32 %v619_v3, %v164_v59  ;;  %v621_v7 = vpop.f32.mrb[6].mxu0  ;;  %v662_v8 = vpop.f32.mrb[6].mxu1  ;;  %v661_v10 = vadd.f32 %v660_v4, %v172_v60 }
 0x199   :  { %v669_v9 = vmax.f32 %v618_v63, 0.0  ;;  %v622_v11 = vpop.f32.mrb[7].mxu0  ;;  %v663_v12 = vpop.f32.mrb[7].mxu1  ;;  %v671_v15 = vmax.f32 %v659_v2, 0.0 }
 0x19a   :  { %v670_v13 = vmax.f32 %v620_v5, 0.0  ;;  %v672_v19 = vmax.f32 %v661_v10, 0.0 }
 0x19b   :  { %v719_v14 = vmul.f32 %v694_v1, %v669_v9  ;;  %v721_v21 = vmul.f32 %v702_v16, %v671_v15 }
 0x19c   :  { %v720_v17 = vmul.f32 %v698_v6, %v670_v13  ;;  %v722_v23 = vmul.f32 %v706_v20, %v672_v19 }
 0x19d   :  { %v726_v18 = vadd.f32 %v725_v52, %v719_v14 }
 0x19f   :  { %v727_v22 = vadd.f32 %v726_v18, %v720_v17 }
 0x1a1   :  { %v728_v25 = vadd.f32 %v727_v22, %v721_v21 }
 0x1a3   :  { %v729_v26 = vadd.f32 %v728_v25, %v722_v23 }
 0x1a5   :  { %730 = vadd.xlane.f32.xlu1 %v729_v26 }
 0x232   :  { %v731_v28 = vpop.xlane.xlu1 %730 }
 0x233   :  { %v734_v29 = vadd.f32 %v733_v27, %v731_v28 }
 0x235   :  { %736 = vst.msk [vmem:[%s971_s7] sm:$0xff] %vm735_vm0, %v734_v29 }
 0x236   :  { %741 = vsyncpa [#allocation4], 1 }

</bundles_post_ra>
